<compile_context>
chip_gen: v6e
topology: v6e:2x2x1
jax: 0.10.0
libtpu: 0.0.40
codegen_flags: <defaults>
</compile_context>

<pallas_src>
import functools

import jax
import jax.numpy as jnp
from jax.experimental import pallas as pl
from jax.experimental.pallas import tpu as pltpu

_LANE = 128  # lane width (last-dim alignment)


def _round_up(x: int, m: int) -> int:
    return (x + m - 1) // m * m


def _fused_mlp_kernel(x_ref, w_ref, b_ref, o_ref, *, num_layers: int,
                      in_features: int):
    """Fused MLP, everything VMEM-resident.

    x_ref: (B, in_features) f32   — unpadded activations
    w_ref: (L, P, P)        bf16  — stacked, zero-padded weights (fan_in, fan_out)
    b_ref: (L, P)           f32   — stacked, zero-padded biases
    o_ref: (B, P)           f32   — lane-dense output slab
    """
    h = x_ref[...].astype(jnp.bfloat16)  # bf16 MXU operand
    for i in range(num_layers):          # statically unrolled
        if i == 0:
            # Layer 0: only the first `in_features` K-rows are meaningful.
            w = w_ref[0, pl.ds(0, in_features), :]
        else:
            w = w_ref[i]                 # (P, P) bf16
        b = b_ref[pl.ds(i, 1), :]        # (1, P) f32, broadcasts over batch
        # MXU matmul with f32 accumulation; bias/ReLU epilogue in f32 (VPU).
        h = jnp.dot(h, w, preferred_element_type=jnp.float32) + b
        if i < num_layers - 1:           # final layer has no activation
            h = jnp.maximum(h, 0.0)
            h = h.astype(jnp.bfloat16)   # bf16 operand for the next matmul
    o_ref[...] = h.astype(o_ref.dtype)


def init_mlp_params(key, in_features, hidden_features, out_features):
    """Deterministic init matching the torch module's layer shapes.

    Layers: Linear(in->h0), ..., Linear(h_last->out).
    Weights stored as (fan_in, fan_out); biases as (fan_out,). Float32.
    """
    features = [in_features] + list(hidden_features) + [out_features]
    params = []
    for i in range(len(features) - 1):
        fan_in, fan_out = features[i], features[i + 1]
        key, kw, kb = jax.random.split(key, 3)
        scale = 1.0 / jnp.sqrt(jnp.float32(fan_in))
        w = jax.random.uniform(kw, (fan_in, fan_out), jnp.float32, -scale, scale)
        bias = jax.random.uniform(kb, (fan_out,), jnp.float32, -scale, scale)
        params.append((w, bias))
    return params


def stack_params(params):
    """Zero-pad every layer to a common lane-aligned (P, P) tile and stack.

    Weights are cast to bf16 once here (MXU operands, half the DMA bytes);
    biases stay f32 for the f32 epilogue.  Zero padding is numerically inert.
    """
    feats = [params[0][0].shape[0]] + [w.shape[1] for w, _ in params]
    P = max(_round_up(f, _LANE) for f in feats)
    L = len(params)
    w_stack = jnp.zeros((L, P, P), jnp.bfloat16)
    b_stack = jnp.zeros((L, P), jnp.float32)
    for i, (w, b) in enumerate(params):
        k, n = w.shape
        w_stack = w_stack.at[i, :k, :n].set(w.astype(jnp.bfloat16))
        b_stack = b_stack.at[i, :n].set(b.astype(jnp.float32))
    return w_stack, b_stack


def _mlp_forward_impl(x, w_stack, b_stack, out_features):
    B, K = x.shape
    L, P, _ = w_stack.shape

    vmem = pl.BlockSpec(memory_space=pltpu.MemorySpace.VMEM)
    kernel = functools.partial(_fused_mlp_kernel, num_layers=L, in_features=K)

    out_slab = pl.pallas_call(
        kernel,
        out_shape=jax.ShapeDtypeStruct((B, P), jnp.float32),
        in_specs=[vmem, vmem, vmem],
        out_specs=vmem,
    )(x, w_stack, b_stack)

    # Single cheap slice back to the logical output width.
    return out_slab[:, :out_features]


mlp_forward = jax.jit(_mlp_forward_impl, static_argnames=("out_features",))


# TODO(synk): bn=True branch (BatchNorm1d between Linear and activation) and the
# 'kaiming'/'normal' init_mode paths are not implemented; this reproduces the
# default constructor path (bn=False, init_mode=None, activation=ReLU).


if __name__ == "__main__":
    key = jax.random.PRNGKey(0)
    batch = 8
    in_features = 32
    hidden_features = [64, 48]
    out_features = 16

    kx, kp = jax.random.split(key)
    x = jax.random.normal(kx, (batch, in_features), jnp.float32)
    params = init_mlp_params(kp, in_features, hidden_features, out_features)
    w_stack, b_stack = stack_params(params)

    y = mlp_forward(x, w_stack, b_stack, out_features)
    y = jax.block_until_ready(y)

    # Reference 1: same numerics as the kernel (bf16 MXU operands, f32 accumulate
    # and f32 bias/ReLU epilogue) -> tight tolerance.
    ref16 = x
    for i, (w, b) in enumerate(params):
        ref16 = jnp.dot(ref16.astype(jnp.bfloat16), w.astype(jnp.bfloat16),
                        preferred_element_type=jnp.float32) + b
        if i < len(params) - 1:
            ref16 = jnp.maximum(ref16, 0.0)

    # Reference 2: pure-f32 math of the torch module -> loose tolerance
    # (bf16 matmul operands introduce ~1e-2-level relative error).
    ref32 = x
    for i, (w, b) in enumerate(params):
        ref32 = ref32 @ w + b
        if i < len(params) - 1:
            ref32 = jnp.maximum(ref32, 0.0)

    assert y.shape == (batch, out_features)
    assert jnp.allclose(y, ref16, atol=2e-3, rtol=2e-3), \
        float(jnp.max(jnp.abs(y - ref16)))
    assert jnp.allclose(y, ref32, atol=8e-2, rtol=8e-2), \
        float(jnp.max(jnp.abs(y - ref32)))

    print("KERNEL_OK")
</pallas_src>

<mosaic_0001>
module attributes {stable_mosaic.version = 11 : i64} {
  func.func @_fused_mlp_kernel(%arg0: memref<8x32xf32, #tpu.memory_space<vmem>>, %arg1: memref<3x128x128xbf16, #tpu.memory_space<vmem>>, %arg2: memref<3x128xf32, #tpu.memory_space<vmem>>, %arg3: memref<8x128xf32, #tpu.memory_space<vmem>>) attributes {dimension_semantics = [], scalar_prefetch = 0 : i64, scratch_operands = 0 : i64, tpu.core_type = #tpu.core_type<tc>} {
    %c0 = arith.constant 0 : index
    %c0_0 = arith.constant 0 : index
    %0 = vector.load %arg0[%c0, %c0_0] : memref<8x32xf32, #tpu.memory_space<vmem>>, vector<8x32xf32>
    %1 = arith.truncf %0 : vector<8x32xf32> to vector<8x32xbf16>
    %c0_1 = arith.constant 0 : index
    %c0_2 = arith.constant 0 : index
    %c0_3 = arith.constant 0 : index
    %2 = vector.load %arg1[%c0_1, %c0_2, %c0_3] : memref<3x128x128xbf16, #tpu.memory_space<vmem>>, vector<1x32x128xbf16>
    %3 = vector.shape_cast %2 : vector<1x32x128xbf16> to vector<32x128xbf16>
    %c0_4 = arith.constant 0 : index
    %c0_5 = arith.constant 0 : index
    %4 = vector.load %arg2[%c0_4, %c0_5] : memref<3x128xf32, #tpu.memory_space<vmem>>, vector<1x128xf32>
    %cst = arith.constant dense<0.000000e+00> : vector<8x128xf32>
    %5 = tpu.matmul %1, %3, %cst {dimension_numbers = #tpu.dot_dimension_numbers<[1], [0], [0], [1], [0, 0, 1, 1], [], []>} : vector<8x32xbf16>, vector<32x128xbf16>, vector<8x128xf32> -> vector<8x128xf32>
    %6 = vector.broadcast %4 : vector<1x128xf32> to vector<8x128xf32>
    %7 = arith.addf %5, %6 : vector<8x128xf32>
    %cst_6 = arith.constant 0.000000e+00 : f32
    %8 = vector.broadcast %cst_6 : f32 to vector<8x128xf32>
    %9 = arith.maximumf %7, %8 : vector<8x128xf32>
    %10 = arith.truncf %9 : vector<8x128xf32> to vector<8x128xbf16>
    %c1 = arith.constant 1 : index
    %c0_7 = arith.constant 0 : index
    %c0_8 = arith.constant 0 : index
    %11 = vector.load %arg1[%c1, %c0_7, %c0_8] : memref<3x128x128xbf16, #tpu.memory_space<vmem>>, vector<1x128x128xbf16>
    %12 = vector.shape_cast %11 : vector<1x128x128xbf16> to vector<128x128xbf16>
    %c1_9 = arith.constant 1 : index
    %c0_10 = arith.constant 0 : index
    %13 = vector.load %arg2[%c1_9, %c0_10] : memref<3x128xf32, #tpu.memory_space<vmem>>, vector<1x128xf32>
    %cst_11 = arith.constant dense<0.000000e+00> : vector<8x128xf32>
    %14 = tpu.matmul %10, %12, %cst_11 {dimension_numbers = #tpu.dot_dimension_numbers<[1], [0], [0], [1], [0, 0, 1, 1], [], []>} : vector<8x128xbf16>, vector<128x128xbf16>, vector<8x128xf32> -> vector<8x128xf32>
    %15 = vector.broadcast %13 : vector<1x128xf32> to vector<8x128xf32>
    %16 = arith.addf %14, %15 : vector<8x128xf32>
    %cst_12 = arith.constant 0.000000e+00 : f32
    %17 = vector.broadcast %cst_12 : f32 to vector<8x128xf32>
    %18 = arith.maximumf %16, %17 : vector<8x128xf32>
    %19 = arith.truncf %18 : vector<8x128xf32> to vector<8x128xbf16>
    %c2 = arith.constant 2 : index
    %c0_13 = arith.constant 0 : index
    %c0_14 = arith.constant 0 : index
    %20 = vector.load %arg1[%c2, %c0_13, %c0_14] : memref<3x128x128xbf16, #tpu.memory_space<vmem>>, vector<1x128x128xbf16>
    %21 = vector.shape_cast %20 : vector<1x128x128xbf16> to vector<128x128xbf16>
    %c2_15 = arith.constant 2 : index
    %c0_16 = arith.constant 0 : index
    %22 = vector.load %arg2[%c2_15, %c0_16] : memref<3x128xf32, #tpu.memory_space<vmem>>, vector<1x128xf32>
    %cst_17 = arith.constant dense<0.000000e+00> : vector<8x128xf32>
    %23 = tpu.matmul %19, %21, %cst_17 {dimension_numbers = #tpu.dot_dimension_numbers<[1], [0], [0], [1], [0, 0, 1, 1], [], []>} : vector<8x128xbf16>, vector<128x128xbf16>, vector<8x128xf32> -> vector<8x128xf32>
    %24 = vector.broadcast %22 : vector<1x128xf32> to vector<8x128xf32>
    %25 = arith.addf %23, %24 : vector<8x128xf32>
    %c0_18 = arith.constant 0 : index
    %c0_19 = arith.constant 0 : index
    %26 = vector.load %arg3[%c0_18, %c0_19] : memref<8x128xf32, #tpu.memory_space<vmem>>, vector<8x128xf32>
    tpu.vector_store %arg3[%c0_18, %c0_19], %25 {strides = array<i32>} : memref<8x128xf32, #tpu.memory_space<vmem>>, vector<8x128xf32>,
    return
  }
}

</mosaic_0001>

<bundles_post_ra>
// kernel: _mlp_forward_impl.1
= control target key start
LH: loop header
LB: loop body
LE: loop exit
PB: predicated region body
PF: predicated region fallthrough
CT: control target
= control target key end

     0   :  { %8 = vsyncpa [#allocation3], 0  ;;  %s628_s0 = inlined_call_operand.hbm [shape: f32[8,32], index: 0, kind: input, shape index: {}]   ;;  %s629_s1 = inlined_call_operand.hbm [shape: bf16[3,128,128], index: 1, kind: input, shape index: {}]   ;;  %s630_s2 = inlined_call_operand.hbm [shape: f32[3,128], index: 2, kind: input, shape index: {}]   ;;  %s631_s3 = inlined_call_operand.hbm [shape: f32[8,128], index: 3, kind: output, shape index: {}]  }
   0x1   :  { %9 = vsyncpa [#allocation6], 0 }
   0x2   :  { %10 = vsyncpa [#allocation4], 0  ;;  %s564_s12 = smov [#allocation5]  }
   0x3   :  { %s26_s13 = sshll.u32 %s564_s12, 4  ;;  %s27_s13 = int_to_ptr.vmem [resolvable:$true] %s26_s13 }
   0x4   :  { %s486_s14 = scalar_lea.vmem %s27_s13, 3072  ;;  %p491_p1 = scmp.lt.s32.totalorder %s27_s13, %s27_s13 }
   0x5   :  { %p487_p0 = scmp.ne.s32.totalorder %s27_s13, %s486_s14  ;;  %p492_p2 = scmp.lt.s32.totalorder %s486_s14, %s486_s14 }
   0x7   :  { %p493_p3 = por %p492_p2, %p491_p1 }
   0x9   :  { %p494_p4 = pnand %p493_p3, %p487_p0 }
   0xb   :  { %497 = shalt.err (!%p494_p4)
}
   0xc   :  { %s565_s15 = smov 64   ;;  %s566_s16 = smov 4  }
   0xd   :  { %32 = dma.hbm_to_vmem [thread:$0]  %s629_s1, 3072, %s27_s13, [#allocation6], %s565_s15, %s565_s15, %s566_s16  }
   0xe   :  { %s567_s19 = smov [#allocation2]   ;;  %s568_s21 = smov [#allocation7]  }
   0xf   :  { %s17_s20 = sshll.u32 %s567_s19, 4  ;;  %s39_s22 = sshll.u32 %s568_s21, 4  ;;  %s18_s20 = int_to_ptr.vmem [resolvable:$true] %s17_s20  ;;  %s40_s22 = int_to_ptr.vmem [resolvable:$true] %s39_s22 }
  0x10   :  { %s506_s23 = scalar_lea.vmem %s18_s20, 128  ;;  %p511_p6 = scmp.lt.s32.totalorder %s18_s20, %s18_s20 }
  0x11   :  { %p507_p5 = scmp.ne.s32.totalorder %s18_s20, %s506_s23  ;;  %p512_p7 = scmp.lt.s32.totalorder %s506_s23, %s506_s23 }
  0x13   :  { %p513_p8 = por %p512_p7, %p511_p6 }
  0x15   :  { %p514_p9 = pnand %p513_p8, %p507_p5 }
  0x17   :  { %517 = shalt.err (!%p514_p9)
}
  0x18   :  { %20 = dma.hbm_to_vmem [thread:$0]  %s628_s0, 128, %s18_s20, [#allocation3]  }
  0x19   :  { %s526_s26 = scalar_lea.vmem %s40_s22, 64  ;;  %p531_p11 = scmp.lt.s32.totalorder %s40_s22, %s40_s22 }
  0x1a   :  { %p527_p10 = scmp.ne.s32.totalorder %s40_s22, %s526_s26  ;;  %p532_p12 = scmp.lt.s32.totalorder %s526_s26, %s526_s26 }
  0x1c   :  { %p533_p13 = por %p532_p12, %p531_p11 }
  0x1e   :  { %p534_p0 = pnand %p533_p13, %p527_p10 }
  0x20   :  { %537 = shalt.err (!%p534_p0)
}
  0x21   :  { %42 = dma.hbm_to_vmem [thread:$0]  %s630_s2, 64, %s40_s22, [#allocation6]  }
  0x22   :  { %558 = dma.done.wait [#allocation3], 128  }
  0x23   :  { %559 = vsyncadd [#allocation3], 4294967168 }
  0x24   :  { %560 = dma.done.wait [#allocation6], 3136  }
  0x25   :  { %561 = vsyncadd [#allocation6], 4294964160  ;;  %v569_v0 = vmov 0.0   ;;  %vm570_vm0 = vmmov 0   ;;  %v460_v1 = vld [vmem:[#allocation5 + $0x8] sm:$0xff]   ;;  %v461_v2 = vld [vmem:[#allocation5] sm:$0xff]  }
  0x26   :  { %404 = vmatprep.subr.bf16.mxu0 %v569_v0  ;;  %408 = vmatprep.mubr.msk.bf16.mxu0 %vm570_vm0, %v569_v0  ;;  %v53_v3 = vld [vmem:[#allocation2] sm:$0xff]  ;;  %v463_v6 = vld [vmem:[#allocation5 + $0x70] sm:$0xff]   ;;  %vm76_vm1 = vcmask 261120   ;;  %v464_v7 = vld [vmem:[#allocation5 + $0x68] sm:$0xff]   ;;  %s571_s0 = smov [#allocation8]  }
  0x27   :  { %412 = vmatprep.subr.bf16.mxu1 %v569_v0  ;;  %428 = vmatprep.mubr.msk.bf16.mxu1 %vm570_vm0, %v569_v0  ;;  %v462_v4 = vld [vmem:[#allocation5 + $0x78] sm:$0xff]   ;;  %v54_v5 = vpack.c.bf16 %v53_v3, %v53_v3  ;;  %v465_v8 = vld [vmem:[#allocation5 + $0x60] sm:$0xff]   ;;  %v467_v10 = vld [vmem:[#allocation5 + $0x50] sm:$0xff]   ;;  %s351_s2 = sshll.u32 %s571_s0, 4  ;;  %s352_s2 = int_to_ptr.vmem [resolvable:$true] %s351_s2 }
  0x28   :  { %405 = vmatpush3.bf16.msra.mxu0 %v460_v1  ;;  %413 = vmatpush3.bf16.msra.mxu1 %v462_v4  ;;  %v466_v9 = vld [vmem:[#allocation5 + $0x58] sm:$0xff]   ;;  %v468_v11 = vld [vmem:[#allocation5 + $0x48] sm:$0xff]   ;;  %v469_v12 = vld [vmem:[#allocation5 + $0x40] sm:$0xff]   ;;  %s538_s28 = scalar_lea.vmem %s352_s2, 128  ;;  %p543_p2 = scmp.lt.s32.totalorder %s352_s2, %s352_s2 }
  0x29   :  { %406 = vmatprep.subr.bf16.mxu0 %v569_v0  ;;  %414 = vmatprep.subr.bf16.mxu1 %v569_v0  ;;  %v470_v13 = vld [vmem:[#allocation5 + $0xb8] sm:$0xff]   ;;  %v471_v14 = vld [vmem:[#allocation5 + $0xb0] sm:$0xff]   ;;  %v472_v15 = vld [vmem:[#allocation5 + $0xa8] sm:$0xff]   ;;  %p539_p1 = scmp.ne.s32.totalorder %s352_s2, %s538_s28  ;;  %p544_p3 = scmp.lt.s32.totalorder %s538_s28, %s538_s28 }
  0x2a   :  { %v473_v16 = vld [vmem:[#allocation5 + $0xa0] sm:$0xff]   ;;  %v474_v17 = vld [vmem:[#allocation5 + $0x98] sm:$0xff]   ;;  %v475_v18 = vld [vmem:[#allocation5 + $0x90] sm:$0xff]  }
  0x2b   :  { %v361_v19 = vld [vmem:[#allocation7] ss:$0 sm:$0xff]  ;;  %v476_v27 = vld [vmem:[#allocation5 + $0x88] sm:$0xff]   ;;  %v365_v29 = vld [vmem:[#allocation7 + $0x1] ss:$0 sm:$0xff]  ;;  %p545_p4 = por %p544_p3, %p543_p2 }
  0x2c   :  { %407 = vmatpush3.bf16.msra.mxu0 %v461_v2  ;;  %415 = vmatpush3.bf16.msra.mxu1 %v463_v6  ;;  %v477_v28 = vld [vmem:[#allocation5 + $0x80] sm:$0xff]  }
  0x2d   :  { %432 = vmatprep.subr.bf16.mxu0 %v569_v0  ;;  %416 = vmatprep.subr.bf16.mxu1 %v569_v0  ;;  %v374_v37 = vld [vmem:[#allocation7 + $0x2] ss:$0 sm:$0xff]  ;;  %p546_p5 = pnand %p545_p4, %p539_p1 }
  0x2f   :  { %409 = vmatmul.mubr.msk.bf16.vlgmr.msra.gmra.mxu0 %vm76_vm1, %v54_v5 }
  0x30   :  { %448 = vmatprep.mubr.msk.bf16.mxu0 %vm570_vm0, %v569_v0  ;;  %417 = vmatpush3.bf16.msra.mxu1 %v464_v7 }
  0x31   :  { %418 = vmatprep.subr.bf16.mxu1 %v569_v0  ;;  %433 = vmatpush3.bf16.msra.mxu0 %v470_v13 }
  0x32   :  { %434 = vmatprep.subr.bf16.mxu0 %v569_v0 }
  0x34   :  { %419 = vmatpush3.bf16.msra.mxu1 %v465_v8 }
  0x35   :  { %420 = vmatprep.subr.bf16.mxu1 %v569_v0  ;;  %435 = vmatpush3.bf16.msra.mxu0 %v471_v14 }
  0x36   :  { %436 = vmatprep.subr.bf16.mxu0 %v569_v0 }
  0x38   :  { %421 = vmatpush3.bf16.msra.mxu1 %v466_v9 }
  0x39   :  { %422 = vmatprep.subr.bf16.mxu1 %v569_v0  ;;  %437 = vmatpush3.bf16.msra.mxu0 %v472_v15 }
  0x3a   :  { %438 = vmatprep.subr.bf16.mxu0 %v569_v0 }
  0x3c   :  { %423 = vmatpush3.bf16.msra.mxu1 %v467_v10 }
  0x3d   :  { %424 = vmatprep.subr.bf16.mxu1 %v569_v0  ;;  %439 = vmatpush3.bf16.msra.mxu0 %v473_v16 }
  0x3e   :  { %440 = vmatprep.subr.bf16.mxu0 %v569_v0 }
  0x40   :  { %425 = vmatpush3.bf16.msra.mxu1 %v468_v11 }
  0x41   :  { %426 = vmatprep.subr.bf16.mxu1 %v569_v0  ;;  %441 = vmatpush3.bf16.msra.mxu0 %v474_v17 }
  0x42   :  { %442 = vmatprep.subr.bf16.mxu0 %v569_v0 }
  0x44   :  { %427 = vmatpush3.bf16.msra.mxu1 %v469_v12 }
  0x45   :  { %443 = vmatpush3.bf16.msra.mxu0 %v475_v18 }
  0x46   :  { %444 = vmatprep.subr.bf16.mxu0 %v569_v0 }
  0x49   :  { %445 = vmatpush3.bf16.msra.mxu0 %v476_v27 }
  0x4a   :  { %446 = vmatprep.subr.bf16.mxu0 %v569_v0 }
  0x4d   :  { %447 = vmatpush3.bf16.msra.mxu0 %v477_v28 }
  0xef   :  { %v114_v20 = vpop.f32.mrf.mxu0 }
  0xf0   :  { %v115_v21 = vadd.f32 %v361_v19, %v114_v20 }
  0xf1   :  { %v410_v22 = vpop.f32.mrf.mxu0 }
  0xf2   :  { %v120_v23 = vmax.f32 %v115_v21, 0.0 }
  0xf3   :  { %v117_v24 = vpop.f32.mrf.mxu0 }
  0xf4   :  { %v121_v25 = vpack.c.bf16 %v120_v23, %v120_v23 }
  0xf5   :  { %v411_v26 = vpop.f32.mrf.mxu0 }
  0xf6   :  { %429 = vmatmul.mubr.bf16.vlgmr.msra.gmra.mxu1 %v121_v25 }
 0x1b6   :  { %v226_v30 = vpop.f32.mrf.mxu1 }
 0x1b7   :  { %v227_v31 = vadd.f32 %v365_v29, %v226_v30 }
 0x1b8   :  { %v430_v32 = vpop.f32.mrf.mxu1 }
 0x1b9   :  { %v232_v33 = vmax.f32 %v227_v31, 0.0 }
 0x1ba   :  { %v229_v34 = vpop.f32.mrf.mxu1 }
 0x1bb   :  { %v233_v35 = vpack.c.bf16 %v232_v33, %v232_v33 }
 0x1bc   :  { %v431_v36 = vpop.f32.mrf.mxu1 }
 0x1bd   :  { %449 = vmatmul.mubr.bf16.vlgmr.msra.gmra.mxu0 %v233_v35 }
 0x27d   :  { %v338_v38 = vpop.f32.mrf.mxu0 }
 0x27e   :  { %v339_v39 = vadd.f32 %v374_v37, %v338_v38 }
 0x27f   :  { %v450_v40 = vpop.f32.mrf.mxu0 }
 0x280   :  { %344 = vst [vmem:[#allocation8] sm:$0xff] %v339_v39 }
 0x281   :  { %v341_v41 = vpop.f32.mrf.mxu0 }
 0x282   :  { %549 = shalt.err (!%p546_p5)
}
 0x283   :  { %354 = dma.vmem_to_hbm [thread:$0]  %s352_s2, 128, %s631_s3, [#allocation4]   ;;  %v451_v42 = vpop.f32.mrf.mxu0 }
 0x284   :  { %562 = dma.done.wait [#allocation4], 128  }
 0x285   :  { %563 = vsyncadd [#allocation4], 4294967168 }
 0x286   :  { %358 = vsyncpa [#allocation3], 1 }
 0x287   :  { %359 = vsyncpa [#allocation6], 1 }
 0x288   :  { %360 = vsyncpa [#allocation4], 1 }

</bundles_post_ra>
